<compile_context>
chip_gen: v6e
topology: v6e:2x2x1
jax: 0.10.0
libtpu: 0.0.40
codegen_flags: <defaults>
</compile_context>

<pallas_src>
import jax
import jax.numpy as jnp
from jax.experimental import pallas as pl
from jax.experimental.pallas import tpu as pltpu

LANE = 128  # TPU lane width; pad n_out up to this


def _round_up(n, m):
    return ((n + m - 1) // m) * m


def _logreg_kernel(x_ref, wt_ref, b_ref, o_ref):
    # x_ref : [TB, n_in]        input dtype (f32), one batch tile per grid step
    # wt_ref: [n_in, n_out_pad] bf16, resident across the grid
    # b_ref : [1, n_out_pad]    f32,  resident
    # o_ref : [TB, n_out_pad]   f32
    # Cast activations to the MXU compute dtype in-register (hidden under DMA).
    x = x_ref[...].astype(wt_ref.dtype)
    wt = wt_ref[...]
    # Linear: x @ W^T + b  -- bf16 operands, f32 accumulation on the MXU.
    z = jnp.dot(x, wt, preferred_element_type=jnp.float32) + b_ref[...]
    # Sigmoid: exp on EUP, approximate reciprocal on EUP (frees VALU slots).
    e = jnp.exp(-z)
    y = pl.reciprocal(1.0 + e, approx=True)
    o_ref[...] = y.astype(o_ref.dtype)


def prepare_params(weight, bias, n_out_padded=LANE, compute_dtype=jnp.bfloat16):
    """One-time parameter prep (outside the hot path).

    weight: [n_out, n_in]  (PyTorch nn.Linear layout)
    bias:   [n_out]
    Returns (wt_padded [n_in, n_out_padded] compute_dtype,
             b_padded  [1, n_out_padded]    f32)
    with the extra output columns zero-padded so they contribute nothing.
    """
    n_out, n_in = weight.shape
    assert n_out_padded >= n_out
    wt = jnp.zeros((n_in, n_out_padded), compute_dtype)
    wt = wt.at[:, :n_out].set(weight.T.astype(compute_dtype))
    b = jnp.zeros((1, n_out_padded), jnp.float32)
    b = b.at[:, :n_out].set(bias.astype(jnp.float32))
    return wt, b


def logistic_regression(x, wt_padded, b_padded, n_out, *, tb=1024):
    """Forward pass: sigmoid(x @ W^T + b), returns [B, n_out] float32.

    x:         [B, n_in] float32 (DMA'd as-is; cast to bf16 inside the kernel)
    wt_padded: [n_in, n_out_padded] bf16  (from prepare_params)
    b_padded:  [1, n_out_padded] float32
    """
    B, n_in = x.shape
    n_out_p = wt_padded.shape[1]

    # Batch tile: multiple of 8 sublanes.  At tb=1024 the double-buffered f32
    # x tile is ~6.4 MiB — far under the default scoped-VMEM limit on all chips.
    TB = min(tb, _round_up(B, 8))
    Bp = _round_up(B, TB)

    if Bp != B:
        x = jnp.pad(x, ((0, Bp - B), (0, 0)))

    y = pl.pallas_call(
        _logreg_kernel,
        out_shape=jax.ShapeDtypeStruct((Bp, n_out_p), jnp.float32),
        grid_spec=pltpu.PrefetchScalarGridSpec(
            num_scalar_prefetch=0,
            grid=(Bp // TB,),
            in_specs=[
                pl.BlockSpec((TB, n_in), lambda i: (i, 0)),       # x tile, pipelined
                pl.BlockSpec((n_in, n_out_p), lambda i: (0, 0)),  # weight, resident
                pl.BlockSpec((1, n_out_p), lambda i: (0, 0)),     # bias, resident
            ],
            out_specs=pl.BlockSpec((TB, n_out_p), lambda i: (i, 0)),
        ),
        compiler_params=pltpu.CompilerParams(
            dimension_semantics=("parallel",),
        ),
    )(x, wt_padded, b_padded)

    return y[:B, :n_out]


if __name__ == "__main__":
    n_inputs = 28 * 28   # 784
    n_outputs = 10
    batch = 8

    key = jax.random.PRNGKey(0)
    kx, kw, kb = jax.random.split(key, 3)

    # Deterministic synthetic parameters (same shapes as torch.nn.Linear(784, 10)).
    bound = 1.0 / (n_inputs ** 0.5)
    x = jax.random.normal(kx, (batch, n_inputs), dtype=jnp.float32)
    weight = jax.random.uniform(kw, (n_outputs, n_inputs),
                                minval=-bound, maxval=bound, dtype=jnp.float32)
    bias = jax.random.uniform(kb, (n_outputs,),
                              minval=-bound, maxval=bound, dtype=jnp.float32)

    # One-time param prep (transpose + lane padding + bf16 cast), outside hot path.
    wt_p, b_p = prepare_params(weight, bias)

    y = logistic_regression(x, wt_p, b_p, n_outputs)
    y = jax.block_until_ready(y)

    # Reference in plain JAX (f32). bf16 matmul + approx reciprocal => loose tol.
    y_ref = jax.nn.sigmoid(x @ weight.T + bias)
    assert y.shape == (batch, n_outputs)
    assert jnp.allclose(y, y_ref, atol=2e-2, rtol=2e-2), float(jnp.max(jnp.abs(y - y_ref)))

    print("KERNEL_OK")
</pallas_src>

<mosaic_0001>
module attributes {stable_mosaic.version = 11 : i64} {
  func.func @_logreg_kernel(%arg0: i32, %arg1: memref<8x784xf32, #tpu.memory_space<vmem>>, %arg2: memref<784x128xbf16, #tpu.memory_space<vmem>>, %arg3: memref<1x128xf32, #tpu.memory_space<vmem>>, %arg4: memref<8x128xf32, #tpu.memory_space<vmem>>) attributes {dimension_semantics = [#tpu.dimension_semantics<parallel>], iteration_bounds = array<i64: 1>, scalar_prefetch = 0 : i64, scratch_operands = 0 : i64, tpu.core_type = #tpu.core_type<tc>, window_params = [{transform_indices = @transform_0, window_bounds = array<i64: 8, 784>}, {pipeline_mode = #tpu.pipeline_mode<synchronous>, transform_indices = @transform_1, window_bounds = array<i64: 784, 128>}, {pipeline_mode = #tpu.pipeline_mode<synchronous>, transform_indices = @transform_2, window_bounds = array<i64: 1, 128>}, {transform_indices = @transform_3, window_bounds = array<i64: 8, 128>}]} {
    %c0 = arith.constant 0 : index
    %c0_0 = arith.constant 0 : index
    %0 = vector.load %arg1[%c0, %c0_0] : memref<8x784xf32, #tpu.memory_space<vmem>>, vector<8x784xf32>
    %1 = arith.truncf %0 : vector<8x784xf32> to vector<8x784xbf16>
    %c0_1 = arith.constant 0 : index
    %c0_2 = arith.constant 0 : index
    %2 = vector.load %arg2[%c0_1, %c0_2] : memref<784x128xbf16, #tpu.memory_space<vmem>>, vector<784x128xbf16>
    %cst = arith.constant dense<0.000000e+00> : vector<8x128xf32>
    %3 = tpu.matmul %1, %2, %cst {dimension_numbers = #tpu.dot_dimension_numbers<[1], [0], [0], [1], [0, 0, 1, 1], [], []>} : vector<8x784xbf16>, vector<784x128xbf16>, vector<8x128xf32> -> vector<8x128xf32>
    %c0_3 = arith.constant 0 : index
    %c0_4 = arith.constant 0 : index
    %4 = vector.load %arg3[%c0_3, %c0_4] : memref<1x128xf32, #tpu.memory_space<vmem>>, vector<1x128xf32>
    %5 = vector.broadcast %4 : vector<1x128xf32> to vector<8x128xf32>
    %6 = arith.addf %3, %5 : vector<8x128xf32>
    %cst_5 = arith.constant 0.000000e+00 : f32
    %7 = vector.broadcast %cst_5 : f32 to vector<8x128xf32>
    %8 = arith.subf %7, %6 : vector<8x128xf32>
    %9 = math.exp %8 : vector<8x128xf32>
    %cst_6 = arith.constant 1.000000e+00 : f32
    %10 = vector.broadcast %cst_6 : f32 to vector<8x128xf32>
    %11 = arith.addf %10, %9 : vector<8x128xf32>
    %12 = tpu.reciprocal %11 {approx = true} : vector<8x128xf32> -> vector<8x128xf32>
    %c0_7 = arith.constant 0 : index
    %c0_8 = arith.constant 0 : index
    %13 = vector.load %arg4[%c0_7, %c0_8] : memref<8x128xf32, #tpu.memory_space<vmem>>, vector<8x128xf32>
    tpu.vector_store %arg4[%c0_7, %c0_8], %12 {strides = array<i32>} : memref<8x128xf32, #tpu.memory_space<vmem>>, vector<8x128xf32>,
    return
  }
  func.func @transform_0(%arg0: i32) -> (i32, i32) {
    %c0_i32 = arith.constant 0 : i32
    %c0_i32_0 = arith.constant 0 : i32
    return %arg0, %c0_i32 : i32, i32
  }
  func.func @transform_1(%arg0: i32) -> (i32, i32) {
    %c0_i32 = arith.constant 0 : i32
    %c0_i32_0 = arith.constant 0 : i32
    %c0_i32_1 = arith.constant 0 : i32
    return %c0_i32, %c0_i32_0 : i32, i32
  }
  func.func @transform_2(%arg0: i32) -> (i32, i32) {
    %c0_i32 = arith.constant 0 : i32
    %c0_i32_0 = arith.constant 0 : i32
    %c0_i32_1 = arith.constant 0 : i32
    return %c0_i32, %c0_i32_0 : i32, i32
  }
  func.func @transform_3(%arg0: i32) -> (i32, i32) {
    %c0_i32 = arith.constant 0 : i32
    %c0_i32_0 = arith.constant 0 : i32
    return %arg0, %c0_i32 : i32, i32
  }
}

</mosaic_0001>

<bundles_post_ra>
// kernel: tpu_custom_call.1
= control target key start
LH: loop header
LB: loop body
LE: loop exit
PB: predicated region body
PF: predicated region fallthrough
CT: control target
= control target key end

     0   :  { %8 = vsyncpa [#allocation3], 0  ;;  %s931_s0 = inlined_call_operand.hbm [shape: f32[8,784], index: 0, kind: input, shape index: {}]   ;;  %s932_s1 = inlined_call_operand.hbm [shape: bf16[784,128], index: 1, kind: input, shape index: {}]   ;;  %s933_s2 = inlined_call_operand.vmem [shape: f32[1,128], index: 2, kind: input, shape index: {}]   ;;  %s934_s3 = inlined_call_operand.hbm [shape: f32[8,128], index: 3, kind: output, shape index: {}]  }
   0x1   :  { %9 = vsyncpa [#allocation6], 0 }
   0x2   :  { %10 = vsyncpa [#allocation4], 0  ;;  %s892_s12 = smov [#allocation2]   ;;  %s893_s14 = smov [#allocation5]  }
   0x3   :  { %s17_s13 = sshll.u32 %s892_s12, 4  ;;  %s26_s15 = sshll.u32 %s893_s14, 4  ;;  %s18_s13 = int_to_ptr.vmem [resolvable:$true] %s17_s13  ;;  %s27_s15 = int_to_ptr.vmem [resolvable:$true] %s26_s15 }
   0x4   :  { %s834_s16 = scalar_lea.vmem %s18_s13, 896  ;;  %p839_p1 = scmp.lt.s32.totalorder %s18_s13, %s18_s13 }
   0x5   :  { %p835_p0 = scmp.ne.s32.totalorder %s18_s13, %s834_s16  ;;  %p840_p2 = scmp.lt.s32.totalorder %s834_s16, %s834_s16 }
   0x7   :  { %p841_p3 = por %p840_p2, %p839_p1 }
   0x9   :  { %p842_p4 = pnand %p841_p3, %p835_p0 }
   0xb   :  { %845 = shalt.err (!%p842_p4)
}
   0xc   :  { %20 = dma.hbm_to_vmem [thread:$0]  %s931_s0, 896, %s18_s13, [#allocation3]  }
   0xd   :  { %s854_s19 = scalar_lea.vmem %s27_s15, 6272  ;;  %p859_p6 = scmp.lt.s32.totalorder %s27_s15, %s27_s15 }
   0xe   :  { %p855_p5 = scmp.ne.s32.totalorder %s27_s15, %s854_s19  ;;  %p860_p7 = scmp.lt.s32.totalorder %s854_s19, %s854_s19 }
  0x10   :  { %p861_p8 = por %p860_p7, %p859_p6 }
  0x12   :  { %p862_p9 = pnand %p861_p8, %p855_p5 }
  0x14   :  { %865 = shalt.err (!%p862_p9)
}
  0x15   :  { %s894_s20 = smov 64   ;;  %s895_s21 = smov 4  }
  0x16   :  { %32 = dma.hbm_to_vmem [thread:$0]  %s932_s1, 6272, %s27_s15, [#allocation6], %s894_s20, %s894_s20, %s895_s21  }
  0x17   :  { %886 = dma.done.wait [#allocation3], 896  }
  0x18   :  { %887 = vsyncadd [#allocation3], 4294966400 }
  0x19   :  { %888 = dma.done.wait [#allocation6], 6272  }
  0x1a   :  { %889 = vsyncadd [#allocation6], 4294961024  ;;  %v773_v0 = vld [vmem:[#allocation5 + $0x78] sm:$0xff]   ;;  %v777_v4 = vld [vmem:[#allocation5 + $0x70] sm:$0xff]   ;;  %v896_v44 = vmov 0.0   ;;  %vm897_vm0 = vmmov 0  }
  0x1b   :  { %v774_v1 = vld [vmem:[#allocation5 + $0x38] sm:$0xff]   ;;  %692 = vmatprep.subr.bf16.mxu0 %v773_v0  ;;  %v778_v5 = vld [vmem:[#allocation5 + $0x30] sm:$0xff]   ;;  %v781_v8 = vld [vmem:[#allocation5 + $0x68] sm:$0xff]   ;;  %vm455_vm1 = vcmask 130048   ;;  %s898_s24 = smov [#allocation7]  }
  0x1c   :  { %v775_v2 = vld [vmem:[#allocation5 + $0xf8] sm:$0xff]   ;;  %693 = vmatpush3.bf16.msra.mxu0 %v774_v1  ;;  %v779_v6 = vld [vmem:[#allocation5 + $0xf0] sm:$0xff]   ;;  %v782_v9 = vld [vmem:[#allocation5 + $0x28] sm:$0xff]   ;;  %s631_s25 = sshll.u32 %s898_s24, 4  ;;  %s632_s25 = int_to_ptr.vmem [resolvable:$true] %s631_s25 }
  0x1d   :  { %v776_v3 = vld [vmem:[#allocation5 + $0xb8] sm:$0xff]   ;;  %714 = vmatprep.subr.bf16.mxu1 %v775_v2  ;;  %694 = vmatprep.subr.bf16.mxu0 %v777_v4  ;;  %v780_v7 = vld [vmem:[#allocation5 + $0xb0] sm:$0xff]   ;;  %v783_v10 = vld [vmem:[#allocation5 + $0xe8] sm:$0xff]   ;;  %p871_p11 = scmp.lt.s32.totalorder %s632_s25, %s632_s25 }
  0x1e   :  { %715 = vmatpush3.bf16.msra.mxu1 %v776_v3  ;;  %v784_v11 = vld [vmem:[#allocation5 + $0xa8] sm:$0xff]   ;;  %v785_v12 = vld [vmem:[#allocation5 + $0x60] sm:$0xff]   ;;  %v789_v16 = vld [vmem:[#allocation5 + $0x58] sm:$0xff]  }
  0x1f   :  { %716 = vmatprep.subr.bf16.mxu1 %v779_v6  ;;  %v786_v13 = vld [vmem:[#allocation5 + $0x20] sm:$0xff]   ;;  %v790_v17 = vld [vmem:[#allocation5 + $0x18] sm:$0xff]   ;;  %v793_v20 = vld [vmem:[#allocation5 + $0x50] sm:$0xff]  }
  0x20   :  { %695 = vmatpush3.bf16.msra.mxu0 %v778_v5  ;;  %v787_v14 = vld [vmem:[#allocation5 + $0xe0] sm:$0xff]   ;;  %v791_v18 = vld [vmem:[#allocation5 + $0xd8] sm:$0xff]   ;;  %v794_v21 = vld [vmem:[#allocation5 + $0x10] sm:$0xff]  }
  0x21   :  { %696 = vmatprep.subr.bf16.mxu0 %v781_v8  ;;  %v788_v15 = vld [vmem:[#allocation5 + $0xa0] sm:$0xff]   ;;  %v792_v19 = vld [vmem:[#allocation5 + $0x98] sm:$0xff]   ;;  %v795_v22 = vld [vmem:[#allocation5 + $0xd0] sm:$0xff]  }
  0x22   :  { %717 = vmatpush3.bf16.msra.mxu1 %v780_v7  ;;  %v796_v23 = vld [vmem:[#allocation5 + $0x90] sm:$0xff]   ;;  %v797_v24 = vld [vmem:[#allocation5 + $0x48] sm:$0xff]   ;;  %v801_v28 = vld [vmem:[#allocation5 + $0x40] sm:$0xff]  }
  0x23   :  { %718 = vmatprep.subr.bf16.mxu1 %v783_v10  ;;  %v798_v25 = vld [vmem:[#allocation5 + $0x8] sm:$0xff]   ;;  %v802_v29 = vld [vmem:[#allocation5] sm:$0xff]   ;;  %v43_v31 = vld [vmem:[#allocation2 + $0x8] sm:$0xff] }
  0x24   :  { %697 = vmatpush3.bf16.msra.mxu0 %v782_v9  ;;  %v799_v26 = vld [vmem:[#allocation5 + $0xc8] sm:$0xff]   ;;  %v803_v30 = vld [vmem:[#allocation5 + $0xc0] sm:$0xff]   ;;  %v50_v32 = vpack.c.bf16 %v43_v31, %v43_v31  ;;  %v805_v36 = vld [vmem:[#allocation5 + $0x178] sm:$0xff]  }
  0x25   :  { %698 = vmatprep.subr.bf16.mxu0 %v785_v12  ;;  %v800_v27 = vld [vmem:[#allocation5 + $0x88] sm:$0xff]   ;;  %v804_v33 = vld [vmem:[#allocation5 + $0x80] sm:$0xff]   ;;  %v806_v39 = vld [vmem:[#allocation5 + $0x138] sm:$0xff]  }
  0x26   :  { %719 = vmatpush3.bf16.msra.mxu1 %v784_v11  ;;  %v42_v34 = vld [vmem:[#allocation2] sm:$0xff]  ;;  %v45_v37 = vld [vmem:[#allocation2 + $0x18] sm:$0xff]  ;;  %491 = vmatprep.mubr.bf16.mxu0 %v50_v32  ;;  %v44_v40 = vld [vmem:[#allocation2 + $0x10] sm:$0xff] }
  0x27   :  { %720 = vmatprep.subr.bf16.mxu1 %v787_v14  ;;  %v49_v35 = vpack.c.bf16 %v42_v34, %v42_v34  ;;  %v52_v38 = vpack.c.bf16 %v45_v37, %v45_v37  ;;  %v51_v41 = vpack.c.bf16 %v44_v40, %v44_v40  ;;  %v807_v42 = vld [vmem:[#allocation5 + $0x170] sm:$0xff]   ;;  %v809_v45 = vld [vmem:[#allocation5 + $0x168] sm:$0xff]   ;;  %v811_v47 = vld [vmem:[#allocation5 + $0x160] sm:$0xff]  }
  0x28   :  { %699 = vmatpush3.bf16.msra.mxu0 %v786_v13  ;;  %v808_v43 = vld [vmem:[#allocation5 + $0x130] sm:$0xff]   ;;  %v810_v46 = vld [vmem:[#allocation5 + $0x128] sm:$0xff]   ;;  %v812_v48 = vld [vmem:[#allocation5 + $0x120] sm:$0xff]  }
  0x29   :  { %700 = vmatprep.subr.bf16.mxu0 %v789_v16  ;;  %531 = vmatprep.mubr.bf16.mxu1 %v52_v38  ;;  %v813_v49 = vld [vmem:[#allocation5 + $0x158] sm:$0xff]   ;;  %v815_v51 = vld [vmem:[#allocation5 + $0x150] sm:$0xff]   ;;  %v821_v52 = vld [vmem:[#allocation5 + $0x180] sm:$0xff]  }
  0x2a   :  { %721 = vmatpush3.bf16.msra.mxu1 %v788_v15  ;;  %v814_v50 = vld [vmem:[#allocation5 + $0x118] sm:$0xff]   ;;  %v47_v53 = vld [vmem:[#allocation2 + $0x28] sm:$0xff]  ;;  %v817_v58 = vld [vmem:[#allocation5 + $0x148] sm:$0xff]  }
  0x2b   :  { %722 = vmatprep.subr.bf16.mxu1 %v791_v18  ;;  %v54_v54 = vpack.c.bf16 %v47_v53, %v47_v53  ;;  %v48_v55 = vld [vmem:[#allocation2 + $0x30] sm:$0xff]  ;;  %v816_v56 = vld [vmem:[#allocation5 + $0x110] sm:$0xff]   ;;  %v818_v59 = vld [vmem:[#allocation5 + $0x108] sm:$0xff]  }
  0x2c   :  { %701 = vmatpush3.bf16.msra.mxu0 %v790_v17  ;;  %v55_v57 = vpack.c.bf16 %v48_v55, %v48_v55  ;;  %v819_v60 = vld [vmem:[#allocation5 + $0x140] sm:$0xff]   ;;  %v46_v62 = vld [vmem:[#allocation2 + $0x20] sm:$0xff] }
  0x2d   :  { %702 = vmatprep.subr.bf16.mxu0 %v793_v20  ;;  %v820_v61 = vld [vmem:[#allocation5 + $0x100] sm:$0xff]   ;;  %v53_v63 = vpack.c.bf16 %v46_v62, %v46_v62  ;;  %v641_v13 = vld [vmem:[%s933_s2] ss:$0 sm:$0xff]  ;;  %s866_s2 = scalar_lea.vmem %s632_s25, 128 }
  0x2e   :  { %723 = vmatpush3.bf16.msra.mxu1 %v792_v19  ;;  %p867_p10 = scmp.ne.s32.totalorder %s632_s25, %s866_s2  ;;  %p872_p12 = scmp.lt.s32.totalorder %s866_s2, %s866_s2 }
  0x2f   :  { %724 = vmatprep.subr.bf16.mxu1 %v795_v22 }
  0x30   :  { %703 = vmatpush3.bf16.msra.mxu0 %v794_v21  ;;  %p873_p13 = por %p872_p12, %p871_p11 }
  0x31   :  { %704 = vmatprep.subr.bf16.mxu0 %v797_v24 }
  0x32   :  { %725 = vmatpush3.bf16.msra.mxu1 %v796_v23  ;;  %p874_p0 = pnand %p873_p13, %p867_p10 }
  0x33   :  { %726 = vmatprep.subr.bf16.mxu1 %v799_v26 }
  0x34   :  { %705 = vmatpush3.bf16.msra.mxu0 %v798_v25 }
  0x35   :  { %706 = vmatprep.subr.bf16.mxu0 %v801_v28 }
  0x36   :  { %727 = vmatpush3.bf16.msra.mxu1 %v800_v27 }
  0x37   :  { %728 = vmatprep.subr.bf16.mxu1 %v803_v30 }
  0x38   :  { %707 = vmatpush3.bf16.msra.mxu0 %v802_v29 }
  0x39   :  { %736 = vmatprep.subr.bf16.mxu0 %v805_v36 }
  0x3a   :  { %729 = vmatpush3.bf16.msra.mxu1 %v804_v33 }
  0x3b   :  { %492 = vmatmul.mubr.bf16.vlgmr.msra.gmra.mxu0 %v49_v35  ;;  %760 = vmatprep.subr.bf16.mxu1 %v896_v44 }
  0x3c   :  { %737 = vmatpush3.bf16.msra.mxu0 %v806_v39  ;;  %571 = vmatprep.mubr.bf16.mxu0 %v54_v54 }
  0x3d   :  { %532 = vmatmul.mubr.bf16.vlgmr.msra.gmra.mxu1 %v51_v41  ;;  %738 = vmatprep.subr.bf16.mxu0 %v807_v42 }
  0x3e   :  { %762 = vmatprep.mubr.msk.bf16.mxu1 %vm897_vm0, %v896_v44  ;;  %761 = vmatpush3.bf16.msra.mxu1 %v821_v52 }
  0x40   :  { %739 = vmatpush3.bf16.msra.mxu0 %v808_v43 }
  0x41   :  { %740 = vmatprep.subr.bf16.mxu0 %v809_v45 }
  0x44   :  { %741 = vmatpush3.bf16.msra.mxu0 %v810_v46 }
  0x45   :  { %742 = vmatprep.subr.bf16.mxu0 %v811_v47  ;;  %763 = vmatmul.mubr.msk.bf16.vlgmr.msra.gmra.mxu1 %vm455_vm1, %v55_v57 }
  0x48   :  { %743 = vmatpush3.bf16.msra.mxu0 %v812_v48 }
  0x49   :  { %744 = vmatprep.subr.bf16.mxu0 %v813_v49 }
  0x4c   :  { %745 = vmatpush3.bf16.msra.mxu0 %v814_v50 }
  0x4d   :  { %746 = vmatprep.subr.bf16.mxu0 %v815_v51 }
  0x50   :  { %747 = vmatpush3.bf16.msra.mxu0 %v816_v56 }
  0x51   :  { %748 = vmatprep.subr.bf16.mxu0 %v817_v58 }
  0x54   :  { %749 = vmatpush3.bf16.msra.mxu0 %v818_v59 }
  0x55   :  { %750 = vmatprep.subr.bf16.mxu0 %v819_v60 }
  0x58   :  { %751 = vmatpush3.bf16.msra.mxu0 %v820_v61 }
  0x5b   :  { %572 = vmatmul.mubr.bf16.vlgmr.msra.gmra.mxu0 %v53_v63 }
  0xfb   :  { %v708_v0 = vpop.f32.mrf.mxu0 }
  0xfd   :  { %v709_v1 = vpop.f32.mrf.mxu0  ;;  %v730_v2 = vpop.f32.mrf.mxu1 }
  0xfe   :  { %v710_v12 = vadd.f32 %v709_v1, %v708_v0 }
  0xff   :  { %v711_v3 = vpop.f32.mrf.mxu0  ;;  %v731_v4 = vpop.f32.mrf.mxu1 }
 0x100   :  { %v494_v14 = vadd.f32 %v710_v12, %v641_v13  ;;  %v732_v15 = vadd.f32 %v731_v4, %v730_v2 }
 0x101   :  { %v712_v5 = vpop.f32.mrf.mxu0  ;;  %v733_v6 = vpop.f32.mrf.mxu1 }
 0x102   :  { %v534_v18 = vadd.f32 %v732_v15, %v494_v14 }
 0x103   :  { %v734_v7 = vpop.f32.mrf.mxu1 }
 0x105   :  { %v613_v8 = vpop.f32.mrf.mxu1 }
 0x107   :  { %v764_v9 = vpop.f32.mrf.mxu1 }
 0x109   :  { %v616_v10 = vpop.f32.mrf.mxu1 }
 0x10b   :  { %v765_v11 = vpop.f32.mrf.mxu1 }
 0x11b   :  { %v752_v16 = vpop.f32.mrf.mxu0 }
 0x11d   :  { %v753_v17 = vpop.f32.mrf.mxu0 }
 0x11e   :  { %v754_v19 = vadd.f32 %v753_v17, %v752_v16 }
 0x11f   :  { %v755_v20 = vpop.f32.mrf.mxu0 }
 0x120   :  { %v574_v21 = vadd.f32 %v754_v19, %v534_v18 }
 0x121   :  { %v756_v22 = vpop.f32.mrf.mxu0 }
 0x122   :  { %v614_v23 = vadd.f32 %v613_v8, %v574_v21 }
 0x124   :  { %v619_v24 = vsub.f32 0.0, %v614_v23 }
 0x126   :  { %v620_v25 = vmul.f32 1.442695, %v619_v24 }
 0x128   :  { %822 = vpow2.f32 %v620_v25 }
 0x135   :  { %v823_v26 = vpop.eup %822 }
 0x136   :  { %v622_v27 = vadd.f32 1.0, %v823_v26 }
 0x138   :  { %824 = vrcp.f32 %v622_v27 }
 0x145   :  { %v825_v28 = vpop.eup %824 }
 0x146   :  { %624 = vst [vmem:[#allocation7] sm:$0xff] %v825_v28 }
 0x147   :  { %877 = shalt.err (!%p874_p0)
}
 0x148   :  { %634 = dma.vmem_to_hbm [thread:$0]  %s632_s25, 128, %s934_s3, [#allocation4]  }
 0x149   :  { %890 = dma.done.wait [#allocation4], 128  }
 0x14a   :  { %891 = vsyncadd [#allocation4], 4294967168 }
 0x14b   :  { %638 = vsyncpa [#allocation3], 1 }
 0x14c   :  { %639 = vsyncpa [#allocation6], 1 }
 0x14d   :  { %640 = vsyncpa [#allocation4], 1 }

</bundles_post_ra>
